<compile_context>
chip_gen: v7x
topology: tpu7x:2x2x1
jax: 0.10.0
libtpu: 0.0.40
codegen_flags: <defaults>
</compile_context>

<pallas_src>
import math

import jax
import jax.numpy as jnp
from jax import lax
from jax.experimental import pallas as pl
from jax.experimental.pallas import tpu as pltpu

_RMS_EPS = 1e-5


# --------------------------------------------------------------------------
# Fused per-layer kernel: residual + RMSNorm + full Mamba block
# --------------------------------------------------------------------------
def _mamba_layer_kernel(x_ref, nw_ref, wi_ref, cw_ref, cb_ref, wbc_ref, wdt_ref,
                        dtb_ref, At_ref, Dv_ref, wo_ref, o_ref, xp_sc, y_sc):
    L, _ = x_ref.shape
    K, Di = cw_ref.shape
    N = At_ref.shape[0]
    pad = xp_sc.shape[0] - L                     # aligned zero prefix (>= K-1)

    x = x_ref[...]                               # (L, Dm) f32 residual input

    # ---- RMSNorm (pre-norm) ----
    xn = x * lax.rsqrt(jnp.mean(x * x, axis=-1, keepdims=True) + _RMS_EPS)
    xn = xn * nw_ref[...]

    # ---- in_proj -> (x, z)   (bf16 operands on the MXU, f32 accumulation) ----
    xz = jnp.dot(xn.astype(jnp.bfloat16), wi_ref[...],
                 preferred_element_type=jnp.float32)           # (L, 2*Di)
    xin = xz[:, :Di]
    z = xz[:, Di:]

    # ---- causal depthwise conv1d + SiLU (padding handled in VMEM scratch) ----
    xp_sc[0:pad, :] = jnp.zeros((pad, Di), jnp.float32)        # aligned zero prefix
    xp_sc[pad:pad + L, :] = xin                                # aligned write
    acc = cb_ref[...]                                          # (1, Di)
    for k in range(K):                                         # K tiny & static
        s = pad - (K - 1) + k
        acc = acc + xp_sc[s:s + L, :] * cw_ref[k:k + 1, :]
    xc = acc * jax.nn.sigmoid(acc)                             # SiLU, (L, Di) f32
    xc16 = xc.astype(jnp.bfloat16)

    # ---- x_proj -> (B, C);  delta = softplus(xc @ W_dt + b) (dt path folded) ----
    bc = jnp.dot(xc16, wbc_ref[...], preferred_element_type=jnp.float32)    # (L, 2N)
    dt_pre = jnp.dot(xc16, wdt_ref[...], preferred_element_type=jnp.float32)
    dt_pre = dt_pre + dtb_ref[...]
    # numerically stable softplus in f32 (exp/log only -> safe lowering)
    delta = jnp.maximum(dt_pre, 0.0) + jnp.log(1.0 + jnp.exp(-jnp.abs(dt_pre)))

    # ---- selective scan: state is a single (N, Di) block ----
    At = At_ref[...]                              # (N, Di) = A^T, A = -exp(A_log)
    du = delta * xc                               # (L, Di)
    Bc = bc[:, :N]                                # (L, N)
    Cc = bc[:, N:]                                # (L, N)
    h = jnp.zeros((N, Di), jnp.float32)
    # L is small & static here -> full unroll; exp() has no dependence on h so it
    # is scheduled off the recurrent critical path (equivalent to a pre-pass).
    for t in range(L):
        dA_t = jnp.exp(delta[t:t + 1, :] * At)                         # (N, Di)
        bdu = lax.dot_general(Bc[t:t + 1, :], du[t:t + 1, :],          # outer product
                              (((0,), (0,)), ((), ())),
                              preferred_element_type=jnp.float32)      # (N, Di)
        h = dA_t * h + bdu
        y_sc[t:t + 1, :] = jnp.dot(Cc[t:t + 1, :], h,                  # (1, Di)
                                   preferred_element_type=jnp.float32)
    y = y_sc[...] + xc * Dv_ref[...]              # add skip term D*u vectorized

    # ---- gate with SiLU(z), out_proj, residual add ----
    y = y * (z * jax.nn.sigmoid(z))
    o_ref[...] = x + jnp.dot(y.astype(jnp.bfloat16), wo_ref[...],
                             preferred_element_type=jnp.float32)


def mamba_layer(x, p):
    Bb, L, Dm = x.shape
    K, Di = p["conv_w"].shape
    N = p["At"].shape[0]
    pad = max(8, ((K - 1 + 7) // 8) * 8)          # sublane-aligned conv zero prefix
    return pl.pallas_call(
        _mamba_layer_kernel,
        out_shape=jax.ShapeDtypeStruct((Bb, L, Dm), jnp.float32),
        grid=(Bb,),
        in_specs=[
            pl.BlockSpec((None, L, Dm), lambda i: (i, 0, 0)),   # x (residual input)
            pl.BlockSpec((1, Dm), lambda i: (0, 0)),            # RMSNorm weight
            pl.BlockSpec((Dm, 2 * Di), lambda i: (0, 0)),       # in_proj  (bf16)
            pl.BlockSpec((K, Di), lambda i: (0, 0)),            # conv weight
            pl.BlockSpec((1, Di), lambda i: (0, 0)),            # conv bias
            pl.BlockSpec((Di, 2 * N), lambda i: (0, 0)),        # x_proj B,C part (bf16)
            pl.BlockSpec((Di, Di), lambda i: (0, 0)),           # folded dt weight (bf16)
            pl.BlockSpec((1, Di), lambda i: (0, 0)),            # dt bias
            pl.BlockSpec((N, Di), lambda i: (0, 0)),            # A^T
            pl.BlockSpec((1, Di), lambda i: (0, 0)),            # D
            pl.BlockSpec((Di, Dm), lambda i: (0, 0)),           # out_proj (bf16)
        ],
        out_specs=pl.BlockSpec((None, L, Dm), lambda i: (i, 0, 0)),
        scratch_shapes=[
            pltpu.VMEM((pad + L, Di), jnp.float32),             # padded conv input
            pltpu.VMEM((L, Di), jnp.float32),                   # scan output rows
        ],
        compiler_params=pltpu.CompilerParams(
            dimension_semantics=("parallel",),    # batch iters independent (2 TCs on v7x)
            vmem_limit_bytes=32 * 1024 * 1024,
        ),
    )(x, p["norm_w"], p["in_proj_w"], p["conv_w"], p["conv_b"],
      p["W_bc"], p["W_dt"], p["dt_proj_b"], p["At"], p["D"], p["out_proj_w"])


# --------------------------------------------------------------------------
# Fused final RMSNorm + head Linear(d_model -> 1) as a lane reduction
# --------------------------------------------------------------------------
def _head_kernel(x_ref, nw_ref, hw_ref, hb_ref, o_ref):
    x = x_ref[...]                                              # (L, Dm)
    xn = x * lax.rsqrt(jnp.mean(x * x, axis=-1, keepdims=True) + _RMS_EPS)
    xn = xn * nw_ref[...]
    # Dropout is identity at inference; Linear(d_model, 1) as a lane reduction.
    o_ref[...] = jnp.sum(xn * hw_ref[...], axis=-1, keepdims=True) + hb_ref[...]


def mamba_head(x, norm_w, head_w, head_b):
    Bb, L, Dm = x.shape
    return pl.pallas_call(
        _head_kernel,
        out_shape=jax.ShapeDtypeStruct((Bb, L, 1), jnp.float32),
        grid=(Bb,),
        in_specs=[
            pl.BlockSpec((None, L, Dm), lambda i: (i, 0, 0)),
            pl.BlockSpec((1, Dm), lambda i: (0, 0)),
            pl.BlockSpec((1, Dm), lambda i: (0, 0)),
            pl.BlockSpec((1, 1), lambda i: (0, 0)),
        ],
        out_specs=pl.BlockSpec((None, L, 1), lambda i: (i, 0, 0)),
        compiler_params=pltpu.CompilerParams(
            dimension_semantics=("parallel",),
            vmem_limit_bytes=32 * 1024 * 1024,
        ),
    )(x, norm_w, head_w, head_b)


def mamba_forward(x, params):
    for lp in params["layers"]:
        x = mamba_layer(x, lp)                                   # one fused call / layer
    return mamba_head(x, params["norm_f_w"], params["head_w"], params["head_b"])


# --------------------------------------------------------------------------
# Deterministic parameter init (shapes follow the reference Mamba __init__);
# weights are pre-folded / pre-transposed / pre-cast ONCE here.
# --------------------------------------------------------------------------
def init_params(key, d_model, n_layers, d_state, d_conv, expand):
    d_inner = expand * d_model
    dt_rank = math.ceil(d_model / 16)

    def rnd(k, shape, fan_in):
        return jax.random.normal(k, shape, jnp.float32) / jnp.sqrt(float(fan_in))

    layers = []
    for _ in range(n_layers):
        key, k0, k1, k2, k3, k4 = jax.random.split(key, 6)
        A = jnp.tile(jnp.arange(1, d_state + 1, dtype=jnp.float32)[None, :],
                     (d_inner, 1))
        A_log = jnp.log(A)
        x_proj_w = rnd(k2, (d_inner, dt_rank + 2 * d_state), d_inner)
        dt_proj_w = rnd(k3, (dt_rank, d_inner), dt_rank)
        layers.append(dict(
            norm_w=jnp.ones((1, d_model), jnp.float32),
            in_proj_w=rnd(k0, (d_model, 2 * d_inner), d_model).astype(jnp.bfloat16),
            conv_w=rnd(k1, (d_conv, d_inner), d_conv),          # [k, d] == torch w[d,0,k]
            conv_b=jnp.zeros((1, d_inner), jnp.float32),
            # dt path folded: delta = softplus(xc @ (x_proj[:, :r] @ dt_proj) + b)
            W_dt=(x_proj_w[:, :dt_rank] @ dt_proj_w).astype(jnp.bfloat16),
            dt_proj_b=jnp.full((1, d_inner), float(math.log(math.expm1(0.01))),
                               jnp.float32),
            W_bc=x_proj_w[:, dt_rank:].astype(jnp.bfloat16),
            At=jnp.transpose(-jnp.exp(A_log)),                  # (d_state, d_inner)
            D=jnp.ones((1, d_inner), jnp.float32),
            out_proj_w=rnd(k4, (d_inner, d_model), d_inner).astype(jnp.bfloat16),
        ))
    key, kh = jax.random.split(key)
    return dict(
        layers=layers,
        norm_f_w=jnp.ones((1, d_model), jnp.float32),
        head_w=jax.random.normal(kh, (1, d_model), jnp.float32)
        / jnp.sqrt(float(d_model)),
        head_b=jnp.zeros((1, 1), jnp.float32),
    )


if __name__ == "__main__":
    # small shapes implied by the module: d_model=32, n_layers=2, d_state=8,
    # d_conv=4, expand=2; input x: (batch=2, seq=8, d_model=32)
    B, L = 2, 8
    d_model, n_layers, d_state, d_conv, expand = 32, 2, 8, 4, 2

    params = init_params(jax.random.PRNGKey(0), d_model, n_layers,
                         d_state, d_conv, expand)
    x = jax.random.normal(jax.random.PRNGKey(0), (B, L, d_model), jnp.float32)

    fwd = jax.jit(mamba_forward)
    out = jax.block_until_ready(fwd(x, params))
    assert out.shape == (B, L, 1) and out.dtype == jnp.float32
    print("KERNEL_OK")
</pallas_src>

<mosaic_0001>
module attributes {stable_mosaic.version = 11 : i64} {
  func.func @_head_kernel(%arg0: i32, %arg1: memref<1x8x32xf32, #tpu.memory_space<vmem>>, %arg2: memref<1x32xf32, #tpu.memory_space<vmem>>, %arg3: memref<1x32xf32, #tpu.memory_space<vmem>>, %arg4: memref<1x1xf32, #tpu.memory_space<vmem>>, %arg5: memref<1x8x1xf32, #tpu.memory_space<vmem>>) attributes {dimension_semantics = [#tpu.dimension_semantics<parallel>], iteration_bounds = array<i64: 2>, scalar_prefetch = 0 : i64, scratch_operands = 0 : i64, tpu.core_type = #tpu.core_type<tc>, window_params = [{transform_indices = @transform_0, window_bounds = array<i64: 1, 8, 32>}, {pipeline_mode = #tpu.pipeline_mode<synchronous>, transform_indices = @transform_1, window_bounds = array<i64: 1, 32>}, {pipeline_mode = #tpu.pipeline_mode<synchronous>, transform_indices = @transform_2, window_bounds = array<i64: 1, 32>}, {pipeline_mode = #tpu.pipeline_mode<synchronous>, transform_indices = @transform_3, window_bounds = array<i64: 1, 1>}, {transform_indices = @transform_4, window_bounds = array<i64: 1, 8, 1>}]} {
    %c0 = arith.constant 0 : index
    %c0_0 = arith.constant 0 : index
    %c0_1 = arith.constant 0 : index
    %0 = vector.load %arg1[%c0, %c0_0, %c0_1] : memref<1x8x32xf32, #tpu.memory_space<vmem>>, vector<1x8x32xf32>
    %1 = vector.shape_cast %0 : vector<1x8x32xf32> to vector<8x32xf32>
    %2 = arith.mulf %1, %1 : vector<8x32xf32>
    %cst = arith.constant dense<0.000000e+00> : vector<8xf32>
    %3 = vector.multi_reduction <add>, %2, %cst [1] : vector<8x32xf32> to vector<8xf32>
    %4 = vector.shape_cast %3 : vector<8xf32> to vector<8x1xf32>
    %cst_2 = arith.constant 3.200000e+01 : f32
    %5 = vector.broadcast %cst_2 : f32 to vector<8x1xf32>
    %6 = arith.divf %4, %5 : vector<8x1xf32>
    %cst_3 = arith.constant 9.99999974E-6 : f32
    %7 = vector.broadcast %cst_3 : f32 to vector<8x1xf32>
    %8 = arith.addf %6, %7 : vector<8x1xf32>
    %9 = math.rsqrt %8 : vector<8x1xf32>
    %10 = vector.broadcast %9 : vector<8x1xf32> to vector<8x32xf32>
    %11 = arith.mulf %1, %10 : vector<8x32xf32>
    %c0_4 = arith.constant 0 : index
    %c0_5 = arith.constant 0 : index
    %12 = vector.load %arg2[%c0_4, %c0_5] : memref<1x32xf32, #tpu.memory_space<vmem>>, vector<1x32xf32>
    %13 = vector.broadcast %12 : vector<1x32xf32> to vector<8x32xf32>
    %14 = arith.mulf %11, %13 : vector<8x32xf32>
    %c0_6 = arith.constant 0 : index
    %c0_7 = arith.constant 0 : index
    %15 = vector.load %arg3[%c0_6, %c0_7] : memref<1x32xf32, #tpu.memory_space<vmem>>, vector<1x32xf32>
    %16 = vector.broadcast %15 : vector<1x32xf32> to vector<8x32xf32>
    %17 = arith.mulf %14, %16 : vector<8x32xf32>
    %cst_8 = arith.constant dense<0.000000e+00> : vector<8xf32>
    %18 = vector.multi_reduction <add>, %17, %cst_8 [1] : vector<8x32xf32> to vector<8xf32>
    %19 = vector.shape_cast %18 : vector<8xf32> to vector<8x1xf32>
    %c0_9 = arith.constant 0 : index
    %c0_10 = arith.constant 0 : index
    %20 = vector.load %arg4[%c0_9, %c0_10] : memref<1x1xf32, #tpu.memory_space<vmem>>, vector<1x1xf32>
    %21 = vector.broadcast %20 : vector<1x1xf32> to vector<8x1xf32>
    %22 = arith.addf %19, %21 : vector<8x1xf32>
    %c0_11 = arith.constant 0 : index
    %c0_12 = arith.constant 0 : index
    %c0_13 = arith.constant 0 : index
    %23 = vector.load %arg5[%c0_11, %c0_12, %c0_13] : memref<1x8x1xf32, #tpu.memory_space<vmem>>, vector<1x8x1xf32>
    %24 = vector.shape_cast %23 : vector<1x8x1xf32> to vector<8x1xf32>
    %25 = vector.shape_cast %22 : vector<8x1xf32> to vector<1x8x1xf32>
    tpu.vector_store %arg5[%c0_11, %c0_12, %c0_13], %25 {strides = array<i32>} : memref<1x8x1xf32, #tpu.memory_space<vmem>>, vector<1x8x1xf32>,
    return
  }
  func.func @transform_0(%arg0: i32) -> (i32, i32, i32) {
    %c0_i32 = arith.constant 0 : i32
    %c0_i32_0 = arith.constant 0 : i32
    %c0_i32_1 = arith.constant 0 : i32
    return %arg0, %c0_i32, %c0_i32_0 : i32, i32, i32
  }
  func.func @transform_1(%arg0: i32) -> (i32, i32) {
    %c0_i32 = arith.constant 0 : i32
    %c0_i32_0 = arith.constant 0 : i32
    %c0_i32_1 = arith.constant 0 : i32
    return %c0_i32, %c0_i32_0 : i32, i32
  }
  func.func @transform_2(%arg0: i32) -> (i32, i32) {
    %c0_i32 = arith.constant 0 : i32
    %c0_i32_0 = arith.constant 0 : i32
    %c0_i32_1 = arith.constant 0 : i32
    return %c0_i32, %c0_i32_0 : i32, i32
  }
  func.func @transform_3(%arg0: i32) -> (i32, i32) {
    %c0_i32 = arith.constant 0 : i32
    %c0_i32_0 = arith.constant 0 : i32
    %c0_i32_1 = arith.constant 0 : i32
    return %c0_i32, %c0_i32_0 : i32, i32
  }
  func.func @transform_4(%arg0: i32) -> (i32, i32, i32) {
    %c0_i32 = arith.constant 0 : i32
    %c0_i32_0 = arith.constant 0 : i32
    %c0_i32_1 = arith.constant 0 : i32
    return %arg0, %c0_i32, %c0_i32_0 : i32, i32, i32
  }
}

module attributes {stable_mosaic.version = 11 : i64} {
  func.func @_mamba_layer_kernel(%arg0: i32, %arg1: memref<1x8x32xf32, #tpu.memory_space<vmem>>, %arg2: memref<1x32xf32, #tpu.memory_space<vmem>>, %arg3: memref<32x128xbf16, #tpu.memory_space<vmem>>, %arg4: memref<4x64xf32, #tpu.memory_space<vmem>>, %arg5: memref<1x64xf32, #tpu.memory_space<vmem>>, %arg6: memref<64x16xbf16, #tpu.memory_space<vmem>>, %arg7: memref<64x64xbf16, #tpu.memory_space<vmem>>, %arg8: memref<1x64xf32, #tpu.memory_space<vmem>>, %arg9: memref<8x64xf32, #tpu.memory_space<vmem>>, %arg10: memref<1x64xf32, #tpu.memory_space<vmem>>, %arg11: memref<64x32xbf16, #tpu.memory_space<vmem>>, %arg12: memref<1x8x32xf32, #tpu.memory_space<vmem>>, %arg13: memref<16x64xf32, #tpu.memory_space<vmem>>, %arg14: memref<8x64xf32, #tpu.memory_space<vmem>>) attributes {dimension_semantics = [#tpu.dimension_semantics<parallel>], iteration_bounds = array<i64: 2>, scalar_prefetch = 0 : i64, scratch_operands = 2 : i64, tpu.core_type = #tpu.core_type<tc>, window_params = [{transform_indices = @transform_0, window_bounds = array<i64: 1, 8, 32>}, {pipeline_mode = #tpu.pipeline_mode<synchronous>, transform_indices = @transform_1, window_bounds = array<i64: 1, 32>}, {pipeline_mode = #tpu.pipeline_mode<synchronous>, transform_indices = @transform_2, window_bounds = array<i64: 32, 128>}, {pipeline_mode = #tpu.pipeline_mode<synchronous>, transform_indices = @transform_3, window_bounds = array<i64: 4, 64>}, {pipeline_mode = #tpu.pipeline_mode<synchronous>, transform_indices = @transform_4, window_bounds = array<i64: 1, 64>}, {pipeline_mode = #tpu.pipeline_mode<synchronous>, transform_indices = @transform_5, window_bounds = array<i64: 64, 16>}, {pipeline_mode = #tpu.pipeline_mode<synchronous>, transform_indices = @transform_6, window_bounds = array<i64: 64, 64>}, {pipeline_mode = #tpu.pipeline_mode<synchronous>, transform_indices = @transform_7, window_bounds = array<i64: 1, 64>}, {pipeline_mode = #tpu.pipeline_mode<synchronous>, transform_indices = @transform_8, window_bounds = array<i64: 8, 64>}, {pipeline_mode = #tpu.pipeline_mode<synchronous>, transform_indices = @transform_9, window_bounds = array<i64: 1, 64>}, {pipeline_mode = #tpu.pipeline_mode<synchronous>, transform_indices = @transform_10, window_bounds = array<i64: 64, 32>}, {transform_indices = @transform_11, window_bounds = array<i64: 1, 8, 32>}]} {
    %c0 = arith.constant 0 : index
    %c0_0 = arith.constant 0 : index
    %c0_1 = arith.constant 0 : index
    %0 = vector.load %arg1[%c0, %c0_0, %c0_1] : memref<1x8x32xf32, #tpu.memory_space<vmem>>, vector<1x8x32xf32>
    %1 = vector.shape_cast %0 : vector<1x8x32xf32> to vector<8x32xf32>
    %2 = arith.mulf %1, %1 : vector<8x32xf32>
    %cst = arith.constant dense<0.000000e+00> : vector<8xf32>
    %3 = vector.multi_reduction <add>, %2, %cst [1] : vector<8x32xf32> to vector<8xf32>
    %4 = vector.shape_cast %3 : vector<8xf32> to vector<8x1xf32>
    %cst_2 = arith.constant 3.200000e+01 : f32
    %5 = vector.broadcast %cst_2 : f32 to vector<8x1xf32>
    %6 = arith.divf %4, %5 : vector<8x1xf32>
    %cst_3 = arith.constant 9.99999974E-6 : f32
    %7 = vector.broadcast %cst_3 : f32 to vector<8x1xf32>
    %8 = arith.addf %6, %7 : vector<8x1xf32>
    %9 = math.rsqrt %8 : vector<8x1xf32>
    %10 = vector.broadcast %9 : vector<8x1xf32> to vector<8x32xf32>
    %11 = arith.mulf %1, %10 : vector<8x32xf32>
    %c0_4 = arith.constant 0 : index
    %c0_5 = arith.constant 0 : index
    %12 = vector.load %arg2[%c0_4, %c0_5] : memref<1x32xf32, #tpu.memory_space<vmem>>, vector<1x32xf32>
    %13 = vector.broadcast %12 : vector<1x32xf32> to vector<8x32xf32>
    %14 = arith.mulf %11, %13 : vector<8x32xf32>
    %15 = arith.truncf %14 : vector<8x32xf32> to vector<8x32xbf16>
    %c0_6 = arith.constant 0 : index
    %c0_7 = arith.constant 0 : index
    %16 = vector.load %arg3[%c0_6, %c0_7] : memref<32x128xbf16, #tpu.memory_space<vmem>>, vector<32x128xbf16>
    %cst_8 = arith.constant dense<0.000000e+00> : vector<8x128xf32>
    %17 = tpu.matmul %15, %16, %cst_8 {dimension_numbers = #tpu.dot_dimension_numbers<[1], [0], [0], [1], [0, 0, 1, 1], [], []>} : vector<8x32xbf16>, vector<32x128xbf16>, vector<8x128xf32> -> vector<8x128xf32>
    %18 = vector.extract_strided_slice %17 {offsets = [0, 0], sizes = [8, 64], strides = [1, 1]} : vector<8x128xf32> to vector<8x64xf32>
    %19 = vector.extract_strided_slice %17 {offsets = [0, 64], sizes = [8, 64], strides = [1, 1]} : vector<8x128xf32> to vector<8x64xf32>
    %cst_9 = arith.constant 0.000000e+00 : f32
    %20 = vector.broadcast %cst_9 : f32 to vector<8x64xf32>
    %c0_10 = arith.constant 0 : index
    %c0_11 = arith.constant 0 : index
    %21 = vector.load %arg13[%c0_10, %c0_11] : memref<16x64xf32, #tpu.memory_space<vmem>>, vector<8x64xf32>
    tpu.vector_store %arg13[%c0_10, %c0_11], %20 {strides = array<i32>} : memref<16x64xf32, #tpu.memory_space<vmem>>, vector<8x64xf32>,
    %c8 = arith.constant 8 : index
    %c0_12 = arith.constant 0 : index
    %22 = vector.load %arg13[%c8, %c0_12] : memref<16x64xf32, #tpu.memory_space<vmem>>, vector<8x64xf32>
    tpu.vector_store %arg13[%c8, %c0_12], %18 {strides = array<i32>} : memref<16x64xf32, #tpu.memory_space<vmem>>, vector<8x64xf32>,
    %c0_13 = arith.constant 0 : index
    %c0_14 = arith.constant 0 : index
    %23 = vector.load %arg5[%c0_13, %c0_14] : memref<1x64xf32, #tpu.memory_space<vmem>>, vector<1x64xf32>
    %c5 = arith.constant 5 : index
    %c0_15 = arith.constant 0 : index
    %24 = vector.load %arg13[%c5, %c0_15] : memref<16x64xf32, #tpu.memory_space<vmem>>, vector<8x64xf32>
    %c0_16 = arith.constant 0 : index
    %c0_17 = arith.constant 0 : index
    %25 = vector.load %arg4[%c0_16, %c0_17] : memref<4x64xf32, #tpu.memory_space<vmem>>, vector<1x64xf32>
    %26 = vector.broadcast %25 : vector<1x64xf32> to vector<8x64xf32>
    %27 = arith.mulf %24, %26 : vector<8x64xf32>
    %28 = vector.broadcast %23 : vector<1x64xf32> to vector<8x64xf32>
    %29 = arith.addf %28, %27 : vector<8x64xf32>
    %c6 = arith.constant 6 : index
    %c0_18 = arith.constant 0 : index
    %30 = vector.load %arg13[%c6, %c0_18] : memref<16x64xf32, #tpu.memory_space<vmem>>, vector<8x64xf32>
    %c1 = arith.constant 1 : index
    %c0_19 = arith.constant 0 : index
    %31 = vector.load %arg4[%c1, %c0_19] : memref<4x64xf32, #tpu.memory_space<vmem>>, vector<1x64xf32>
    %32 = vector.broadcast %31 : vector<1x64xf32> to vector<8x64xf32>
    %33 = arith.mulf %30, %32 : vector<8x64xf32>
    %34 = arith.addf %29, %33 : vector<8x64xf32>
    %c7 = arith.constant 7 : index
    %c0_20 = arith.constant 0 : index
    %35 = vector.load %arg13[%c7, %c0_20] : memref<16x64xf32, #tpu.memory_space<vmem>>, vector<8x64xf32>
    %c2 = arith.constant 2 : index
    %c0_21 = arith.constant 0 : index
    %36 = vector.load %arg4[%c2, %c0_21] : memref<4x64xf32, #tpu.memory_space<vmem>>, vector<1x64xf32>
    %37 = vector.broadcast %36 : vector<1x64xf32> to vector<8x64xf32>
    %38 = arith.mulf %35, %37 : vector<8x64xf32>
    %39 = arith.addf %34, %38 : vector<8x64xf32>
    %c8_22 = arith.constant 8 : index
    %c0_23 = arith.constant 0 : index
    %40 = vector.load %arg13[%c8_22, %c0_23] : memref<16x64xf32, #tpu.memory_space<vmem>>, vector<8x64xf32>
    %c3 = arith.constant 3 : index
    %c0_24 = arith.constant 0 : index
    %41 = vector.load %arg4[%c3, %c0_24] : memref<4x64xf32, #tpu.memory_space<vmem>>, vector<1x64xf32>
    %42 = vector.broadcast %41 : vector<1x64xf32> to vector<8x64xf32>
    %43 = arith.mulf %40, %42 : vector<8x64xf32>
    %44 = arith.addf %39, %43 : vector<8x64xf32>
    %45 = arith.negf %44 : vector<8x64xf32>
    %46 = math.exp %45 : vector<8x64xf32>
    %cst_25 = arith.constant 1.000000e+00 : f32
    %47 = vector.broadcast %cst_25 : f32 to vector<8x64xf32>
    %48 = arith.addf %47, %46 : vector<8x64xf32>
    %49 = arith.divf %47, %48 : vector<8x64xf32>
    %50 = arith.mulf %44, %49 : vector<8x64xf32>
    %51 = arith.truncf %50 : vector<8x64xf32> to vector<8x64xbf16>
    %c0_26 = arith.constant 0 : index
    %c0_27 = arith.constant 0 : index
    %52 = vector.load %arg6[%c0_26, %c0_27] : memref<64x16xbf16, #tpu.memory_space<vmem>>, vector<64x16xbf16>
    %cst_28 = arith.constant dense<0.000000e+00> : vector<8x16xf32>
    %53 = tpu.matmul %51, %52, %cst_28 {dimension_numbers = #tpu.dot_dimension_numbers<[1], [0], [0], [1], [0, 0, 1, 1], [], []>} : vector<8x64xbf16>, vector<64x16xbf16>, vector<8x16xf32> -> vector<8x16xf32>
    %c0_29 = arith.constant 0 : index
    %c0_30 = arith.constant 0 : index
    %54 = vector.load %arg7[%c0_29, %c0_30] : memref<64x64xbf16, #tpu.memory_space<vmem>>, vector<64x64xbf16>
    %cst_31 = arith.constant dense<0.000000e+00> : vector<8x64xf32>
    %55 = tpu.matmul %51, %54, %cst_31 {dimension_numbers = #tpu.dot_dimension_numbers<[1], [0], [0], [1], [0, 0, 1, 1], [], []>} : vector<8x64xbf16>, vector<64x64xbf16>, vector<8x64xf32> -> vector<8x64xf32>
    %c0_32 = arith.constant 0 : index
    %c0_33 = arith.constant 0 : index
    %56 = vector.load %arg8[%c0_32, %c0_33] : memref<1x64xf32, #tpu.memory_space<vmem>>, vector<1x64xf32>
    %57 = vector.broadcast %56 : vector<1x64xf32> to vector<8x64xf32>
    %58 = arith.addf %55, %57 : vector<8x64xf32>
    %cst_34 = arith.constant 0.000000e+00 : f32
    %59 = vector.broadcast %cst_34 : f32 to vector<8x64xf32>
    %60 = arith.maximumf %58, %59 : vector<8x64xf32>
    %61 = math.absf %58 : vector<8x64xf32>
    %cst_35 = arith.constant 0.000000e+00 : f32
    %62 = vector.broadcast %cst_35 : f32 to vector<8x64xf32>
    %63 = arith.subf %62, %61 : vector<8x64xf32>
    %64 = math.exp %63 : vector<8x64xf32>
    %cst_36 = arith.constant 1.000000e+00 : f32
    %65 = vector.broadcast %cst_36 : f32 to vector<8x64xf32>
    %66 = arith.addf %65, %64 : vector<8x64xf32>
    %67 = math.log %66 : vector<8x64xf32>
    %68 = arith.addf %60, %67 : vector<8x64xf32>
    %c0_37 = arith.constant 0 : index
    %c0_38 = arith.constant 0 : index
    %69 = vector.load %arg9[%c0_37, %c0_38] : memref<8x64xf32, #tpu.memory_space<vmem>>, vector<8x64xf32>
    %70 = arith.mulf %68, %50 : vector<8x64xf32>
    %71 = vector.extract_strided_slice %53 {offsets = [0, 0], sizes = [8, 8], strides = [1, 1]} : vector<8x16xf32> to vector<8x8xf32>
    %72 = vector.extract_strided_slice %53 {offsets = [0, 8], sizes = [8, 8], strides = [1, 1]} : vector<8x16xf32> to vector<8x8xf32>
    %cst_39 = arith.constant 0.000000e+00 : f32
    %73 = vector.broadcast %cst_39 : f32 to vector<8x64xf32>
    %74 = vector.extract_strided_slice %68 {offsets = [0, 0], sizes = [1, 64], strides = [1, 1]} : vector<8x64xf32> to vector<1x64xf32>
    %75 = vector.broadcast %74 : vector<1x64xf32> to vector<8x64xf32>
    %76 = arith.mulf %75, %69 : vector<8x64xf32>
    %77 = math.exp %76 : vector<8x64xf32>
    %78 = vector.extract_strided_slice %71 {offsets = [0, 0], sizes = [1, 8], strides = [1, 1]} : vector<8x8xf32> to vector<1x8xf32>
    %79 = vector.extract_strided_slice %70 {offsets = [0, 0], sizes = [1, 64], strides = [1, 1]} : vector<8x64xf32> to vector<1x64xf32>
    %cst_40 = arith.constant dense<0.000000e+00> : vector<8x64xf32>
    %80 = tpu.matmul %78, %79, %cst_40 {dimension_numbers = #tpu.dot_dimension_numbers<[0], [0], [1], [1], [0, 1, 1, 1], [], []>} : vector<1x8xf32>, vector<1x64xf32>, vector<8x64xf32> -> vector<8x64xf32>
    %81 = arith.mulf %77, %73 : vector<8x64xf32>
    %82 = arith.addf %81, %80 : vector<8x64xf32>
    %83 = vector.extract_strided_slice %72 {offsets = [0, 0], sizes = [1, 8], strides = [1, 1]} : vector<8x8xf32> to vector<1x8xf32>
    %cst_41 = arith.constant dense<0.000000e+00> : vector<1x64xf32>
    %84 = tpu.matmul %83, %82, %cst_41 {dimension_numbers = #tpu.dot_dimension_numbers<[1], [0], [0], [1], [0, 0, 1, 1], [], []>} : vector<1x8xf32>, vector<8x64xf32>, vector<1x64xf32> -> vector<1x64xf32>
    %c0_42 = arith.constant 0 : index
    %c0_43 = arith.constant 0 : index
    %85 = vector.load %arg14[%c0_42, %c0_43] : memref<8x64xf32, #tpu.memory_space<vmem>>, vector<1x64xf32>
    tpu.vector_store %arg14[%c0_42, %c0_43], %84 {strides = array<i32>} : memref<8x64xf32, #tpu.memory_space<vmem>>, vector<1x64xf32>,
    %86 = vector.extract_strided_slice %68 {offsets = [1, 0], sizes = [1, 64], strides = [1, 1]} : vector<8x64xf32> to vector<1x64xf32>
    %87 = vector.broadcast %86 : vector<1x64xf32> to vector<8x64xf32>
    %88 = arith.mulf %87, %69 : vector<8x64xf32>
    %89 = math.exp %88 : vector<8x64xf32>
    %90 = vector.extract_strided_slice %71 {offsets = [1, 0], sizes = [1, 8], strides = [1, 1]} : vector<8x8xf32> to vector<1x8xf32>
    %91 = vector.extract_strided_slice %70 {offsets = [1, 0], sizes = [1, 64], strides = [1, 1]} : vector<8x64xf32> to vector<1x64xf32>
    %cst_44 = arith.constant dense<0.000000e+00> : vector<8x64xf32>
    %92 = tpu.matmul %90, %91, %cst_44 {dimension_numbers = #tpu.dot_dimension_numbers<[0], [0], [1], [1], [0, 1, 1, 1], [], []>} : vector<1x8xf32>, vector<1x64xf32>, vector<8x64xf32> -> vector<8x64xf32>
    %93 = arith.mulf %89, %82 : vector<8x64xf32>
    %94 = arith.addf %93, %92 : vector<8x64xf32>
    %95 = vector.extract_strided_slice %72 {offsets = [1, 0], sizes = [1, 8], strides = [1, 1]} : vector<8x8xf32> to vector<1x8xf32>
    %cst_45 = arith.constant dense<0.000000e+00> : vector<1x64xf32>
    %96 = tpu.matmul %95, %94, %cst_45 {dimension_numbers = #tpu.dot_dimension_numbers<[1], [0], [0], [1], [0, 0, 1, 1], [], []>} : vector<1x8xf32>, vector<8x64xf32>, vector<1x64xf32> -> vector<1x64xf32>
    %c1_46 = arith.constant 1 : index
    %c0_47 = arith.constant 0 : index
    %97 = vector.load %arg14[%c1_46, %c0_47] : memref<8x64xf32, #tpu.memory_space<vmem>>, vector<1x64xf32>
    tpu.vector_store %arg14[%c1_46, %c0_47], %96 {strides = array<i32>} : memref<8x64xf32, #tpu.memory_space<vmem>>, vector<1x64xf32>,
    %98 = vector.extract_strided_slice %68 {offsets = [2, 0], sizes = [1, 64], strides = [1, 1]} : vector<8x64xf32> to vector<1x64xf32>
    %99 = vector.broadcast %98 : vector<1x64xf32> to vector<8x64xf32>
    %100 = arith.mulf %99, %69 : vector<8x64xf32>
    %101 = math.exp %100 : vector<8x64xf32>
    %102 = vector.extract_strided_slice %71 {offsets = [2, 0], sizes = [1, 8], strides = [1, 1]} : vector<8x8xf32> to vector<1x8xf32>
    %103 = vector.extract_strided_slice %70 {offsets = [2, 0], sizes = [1, 64], strides = [1, 1]} : vector<8x64xf32> to vector<1x64xf32>
    %cst_48 = arith.constant dense<0.000000e+00> : vector<8x64xf32>
    %104 = tpu.matmul %102, %103, %cst_48 {dimension_numbers = #tpu.dot_dimension_numbers<[0], [0], [1], [1], [0, 1, 1, 1], [], []>} : vector<1x8xf32>, vector<1x64xf32>, vector<8x64xf32> -> vector<8x64xf32>
    %105 = arith.mulf %101, %94 : vector<8x64xf32>
    %106 = arith.addf %105, %104 : vector<8x64xf32>
    %107 = vector.extract_strided_slice %72 {offsets = [2, 0], sizes = [1, 8], strides = [1, 1]} : vector<8x8xf32> to vector<1x8xf32>
    %cst_49 = arith.constant dense<0.000000e+00> : vector<1x64xf32>
    %108 = tpu.matmul %107, %106, %cst_49 {dimension_numbers = #tpu.dot_dimension_numbers<[1], [0], [0], [1], [0, 0, 1, 1], [], []>} : vector<1x8xf32>, vector<8x64xf32>, vector<1x64xf32> -> vector<1x64xf32>
    %c2_50 = arith.constant 2 : index
    %c0_51 = arith.constant 0 : index
    %109 = vector.load %arg14[%c2_50, %c0_51] : memref<8x64xf32, #tpu.memory_space<vmem>>, vector<1x64xf32>
    tpu.vector_store %arg14[%c2_50, %c0_51], %108 {strides = array<i32>} : memref<8x64xf32, #tpu.memory_space<vmem>>, vector<1x64xf32>,
    %110 = vector.extract_strided_slice %68 {offsets = [3, 0], sizes = [1, 64], strides = [1, 1]} : vector<8x64xf32> to vector<1x64xf32>
    %111 = vector.broadcast %110 : vector<1x64xf32> to vector<8x64xf32>
    %112 = arith.mulf %111, %69 : vector<8x64xf32>
    %113 = math.exp %112 : vector<8x64xf32>
    %114 = vector.extract_strided_slice %71 {offsets = [3, 0], sizes = [1, 8], strides = [1, 1]} : vector<8x8xf32> to vector<1x8xf32>
    %115 = vector.extract_strided_slice %70 {offsets = [3, 0], sizes = [1, 64], strides = [1, 1]} : vector<8x64xf32> to vector<1x64xf32>
    %cst_52 = arith.constant dense<0.000000e+00> : vector<8x64xf32>
    %116 = tpu.matmul %114, %115, %cst_52 {dimension_numbers = #tpu.dot_dimension_numbers<[0], [0], [1], [1], [0, 1, 1, 1], [], []>} : vector<1x8xf32>, vector<1x64xf32>, vector<8x64xf32> -> vector<8x64xf32>
    %117 = arith.mulf %113, %106 : vector<8x64xf32>
    %118 = arith.addf %117, %116 : vector<8x64xf32>
    %119 = vector.extract_strided_slice %72 {offsets = [3, 0], sizes = [1, 8], strides = [1, 1]} : vector<8x8xf32> to vector<1x8xf32>
    %cst_53 = arith.constant dense<0.000000e+00> : vector<1x64xf32>
    %120 = tpu.matmul %119, %118, %cst_53 {dimension_numbers = #tpu.dot_dimension_numbers<[1], [0], [0], [1], [0, 0, 1, 1], [], []>} : vector<1x8xf32>, vector<8x64xf32>, vector<1x64xf32> -> vector<1x64xf32>
    %c3_54 = arith.constant 3 : index
    %c0_55 = arith.constant 0 : index
    %121 = vector.load %arg14[%c3_54, %c0_55] : memref<8x64xf32, #tpu.memory_space<vmem>>, vector<1x64xf32>
    tpu.vector_store %arg14[%c3_54, %c0_55], %120 {strides = array<i32>} : memref<8x64xf32, #tpu.memory_space<vmem>>, vector<1x64xf32>,
    %122 = vector.extract_strided_slice %68 {offsets = [4, 0], sizes = [1, 64], strides = [1, 1]} : vector<8x64xf32> to vector<1x64xf32>
    %123 = vector.broadcast %122 : vector<1x64xf32> to vector<8x64xf32>
    %124 = arith.mulf %123, %69 : vector<8x64xf32>
    %125 = math.exp %124 : vector<8x64xf32>
    %126 = vector.extract_strided_slice %71 {offsets = [4, 0], sizes = [1, 8], strides = [1, 1]} : vector<8x8xf32> to vector<1x8xf32>
    %127 = vector.extract_strided_slice %70 {offsets = [4, 0], sizes = [1, 64], strides = [1, 1]} : vector<8x64xf32> to vector<1x64xf32>
    %cst_56 = arith.constant dense<0.000000e+00> : vector<8x64xf32>
    %128 = tpu.matmul %126, %127, %cst_56 {dimension_numbers = #tpu.dot_dimension_numbers<[0], [0], [1], [1], [0, 1, 1, 1], [], []>} : vector<1x8xf32>, vector<1x64xf32>, vector<8x64xf32> -> vector<8x64xf32>
    %129 = arith.mulf %125, %118 : vector<8x64xf32>
    %130 = arith.addf %129, %128 : vector<8x64xf32>
    %131 = vector.extract_strided_slice %72 {offsets = [4, 0], sizes = [1, 8], strides = [1, 1]} : vector<8x8xf32> to vector<1x8xf32>
    %cst_57 = arith.constant dense<0.000000e+00> : vector<1x64xf32>
    %132 = tpu.matmul %131, %130, %cst_57 {dimension_numbers = #tpu.dot_dimension_numbers<[1], [0], [0], [1], [0, 0, 1, 1], [], []>} : vector<1x8xf32>, vector<8x64xf32>, vector<1x64xf32> -> vector<1x64xf32>
    %c4 = arith.constant 4 : index
    %c0_58 = arith.constant 0 : index
    %133 = vector.load %arg14[%c4, %c0_58] : memref<8x64xf32, #tpu.memory_space<vmem>>, vector<1x64xf32>
    tpu.vector_store %arg14[%c4, %c0_58], %132 {strides = array<i32>} : memref<8x64xf32, #tpu.memory_space<vmem>>, vector<1x64xf32>,
    %134 = vector.extract_strided_slice %68 {offsets = [5, 0], sizes = [1, 64], strides = [1, 1]} : vector<8x64xf32> to vector<1x64xf32>
    %135 = vector.broadcast %134 : vector<1x64xf32> to vector<8x64xf32>
    %136 = arith.mulf %135, %69 : vector<8x64xf32>
    %137 = math.exp %136 : vector<8x64xf32>
    %138 = vector.extract_strided_slice %71 {offsets = [5, 0], sizes = [1, 8], strides = [1, 1]} : vector<8x8xf32> to vector<1x8xf32>
    %139 = vector.extract_strided_slice %70 {offsets = [5, 0], sizes = [1, 64], strides = [1, 1]} : vector<8x64xf32> to vector<1x64xf32>
    %cst_59 = arith.constant dense<0.000000e+00> : vector<8x64xf32>
    %140 = tpu.matmul %138, %139, %cst_59 {dimension_numbers = #tpu.dot_dimension_numbers<[0], [0], [1], [1], [0, 1, 1, 1], [], []>} : vector<1x8xf32>, vector<1x64xf32>, vector<8x64xf32> -> vector<8x64xf32>
    %141 = arith.mulf %137, %130 : vector<8x64xf32>
    %142 = arith.addf %141, %140 : vector<8x64xf32>
    %143 = vector.extract_strided_slice %72 {offsets = [5, 0], sizes = [1, 8], strides = [1, 1]} : vector<8x8xf32> to vector<1x8xf32>
    %cst_60 = arith.constant dense<0.000000e+00> : vector<1x64xf32>
    %144 = tpu.matmul %143, %142, %cst_60 {dimension_numbers = #tpu.dot_dimension_numbers<[1], [0], [0], [1], [0, 0, 1, 1], [], []>} : vector<1x8xf32>, vector<8x64xf32>, vector<1x64xf32> -> vector<1x64xf32>
    %c5_61 = arith.constant 5 : index
    %c0_62 = arith.constant 0 : index
    %145 = vector.load %arg14[%c5_61, %c0_62] : memref<8x64xf32, #tpu.memory_space<vmem>>, vector<1x64xf32>
    tpu.vector_store %arg14[%c5_61, %c0_62], %144 {strides = array<i32>} : memref<8x64xf32, #tpu.memory_space<vmem>>, vector<1x64xf32>,
    %146 = vector.extract_strided_slice %68 {offsets = [6, 0], sizes = [1, 64], strides = [1, 1]} : vector<8x64xf32> to vector<1x64xf32>
    %147 = vector.broadcast %146 : vector<1x64xf32> to vector<8x64xf32>
    %148 = arith.mulf %147, %69 : vector<8x64xf32>
    %149 = math.exp %148 : vector<8x64xf32>
    %150 = vector.extract_strided_slice %71 {offsets = [6, 0], sizes = [1, 8], strides = [1, 1]} : vector<8x8xf32> to vector<1x8xf32>
    %151 = vector.extract_strided_slice %70 {offsets = [6, 0], sizes = [1, 64], strides = [1, 1]} : vector<8x64xf32> to vector<1x64xf32>
    %cst_63 = arith.constant dense<0.000000e+00> : vector<8x64xf32>
    %152 = tpu.matmul %150, %151, %cst_63 {dimension_numbers = #tpu.dot_dimension_numbers<[0], [0], [1], [1], [0, 1, 1, 1], [], []>} : vector<1x8xf32>, vector<1x64xf32>, vector<8x64xf32> -> vector<8x64xf32>
    %153 = arith.mulf %149, %142 : vector<8x64xf32>
    %154 = arith.addf %153, %152 : vector<8x64xf32>
    %155 = vector.extract_strided_slice %72 {offsets = [6, 0], sizes = [1, 8], strides = [1, 1]} : vector<8x8xf32> to vector<1x8xf32>
    %cst_64 = arith.constant dense<0.000000e+00> : vector<1x64xf32>
    %156 = tpu.matmul %155, %154, %cst_64 {dimension_numbers = #tpu.dot_dimension_numbers<[1], [0], [0], [1], [0, 0, 1, 1], [], []>} : vector<1x8xf32>, vector<8x64xf32>, vector<1x64xf32> -> vector<1x64xf32>
    %c6_65 = arith.constant 6 : index
    %c0_66 = arith.constant 0 : index
    %157 = vector.load %arg14[%c6_65, %c0_66] : memref<8x64xf32, #tpu.memory_space<vmem>>, vector<1x64xf32>
    tpu.vector_store %arg14[%c6_65, %c0_66], %156 {strides = array<i32>} : memref<8x64xf32, #tpu.memory_space<vmem>>, vector<1x64xf32>,
    %158 = vector.extract_strided_slice %68 {offsets = [7, 0], sizes = [1, 64], strides = [1, 1]} : vector<8x64xf32> to vector<1x64xf32>
    %159 = vector.broadcast %158 : vector<1x64xf32> to vector<8x64xf32>
    %160 = arith.mulf %159, %69 : vector<8x64xf32>
    %161 = math.exp %160 : vector<8x64xf32>
    %162 = vector.extract_strided_slice %71 {offsets = [7, 0], sizes = [1, 8], strides = [1, 1]} : vector<8x8xf32> to vector<1x8xf32>
    %163 = vector.extract_strided_slice %70 {offsets = [7, 0], sizes = [1, 64], strides = [1, 1]} : vector<8x64xf32> to vector<1x64xf32>
    %cst_67 = arith.constant dense<0.000000e+00> : vector<8x64xf32>
    %164 = tpu.matmul %162, %163, %cst_67 {dimension_numbers = #tpu.dot_dimension_numbers<[0], [0], [1], [1], [0, 1, 1, 1], [], []>} : vector<1x8xf32>, vector<1x64xf32>, vector<8x64xf32> -> vector<8x64xf32>
    %165 = arith.mulf %161, %154 : vector<8x64xf32>
    %166 = arith.addf %165, %164 : vector<8x64xf32>
    %167 = vector.extract_strided_slice %72 {offsets = [7, 0], sizes = [1, 8], strides = [1, 1]} : vector<8x8xf32> to vector<1x8xf32>
    %cst_68 = arith.constant dense<0.000000e+00> : vector<1x64xf32>
    %168 = tpu.matmul %167, %166, %cst_68 {dimension_numbers = #tpu.dot_dimension_numbers<[1], [0], [0], [1], [0, 0, 1, 1], [], []>} : vector<1x8xf32>, vector<8x64xf32>, vector<1x64xf32> -> vector<1x64xf32>
    %c7_69 = arith.constant 7 : index
    %c0_70 = arith.constant 0 : index
    %169 = vector.load %arg14[%c7_69, %c0_70] : memref<8x64xf32, #tpu.memory_space<vmem>>, vector<1x64xf32>
    tpu.vector_store %arg14[%c7_69, %c0_70], %168 {strides = array<i32>} : memref<8x64xf32, #tpu.memory_space<vmem>>, vector<1x64xf32>,
    %c0_71 = arith.constant 0 : index
    %c0_72 = arith.constant 0 : index
    %170 = vector.load %arg14[%c0_71, %c0_72] : memref<8x64xf32, #tpu.memory_space<vmem>>, vector<8x64xf32>
    %c0_73 = arith.constant 0 : index
    %c0_74 = arith.constant 0 : index
    %171 = vector.load %arg10[%c0_73, %c0_74] : memref<1x64xf32, #tpu.memory_space<vmem>>, vector<1x64xf32>
    %172 = vector.broadcast %171 : vector<1x64xf32> to vector<8x64xf32>
    %173 = arith.mulf %50, %172 : vector<8x64xf32>
    %174 = arith.addf %170, %173 : vector<8x64xf32>
    %175 = arith.negf %19 : vector<8x64xf32>
    %176 = math.exp %175 : vector<8x64xf32>
    %cst_75 = arith.constant 1.000000e+00 : f32
    %177 = vector.broadcast %cst_75 : f32 to vector<8x64xf32>
    %178 = arith.addf %177, %176 : vector<8x64xf32>
    %179 = arith.divf %177, %178 : vector<8x64xf32>
    %180 = arith.mulf %19, %179 : vector<8x64xf32>
    %181 = arith.mulf %174, %180 : vector<8x64xf32>
    %182 = arith.truncf %181 : vector<8x64xf32> to vector<8x64xbf16>
    %c0_76 = arith.constant 0 : index
    %c0_77 = arith.constant 0 : index
    %183 = vector.load %arg11[%c0_76, %c0_77] : memref<64x32xbf16, #tpu.memory_space<vmem>>, vector<64x32xbf16>
    %cst_78 = arith.constant dense<0.000000e+00> : vector<8x32xf32>
    %184 = tpu.matmul %182, %183, %cst_78 {dimension_numbers = #tpu.dot_dimension_numbers<[1], [0], [0], [1], [0, 0, 1, 1], [], []>} : vector<8x64xbf16>, vector<64x32xbf16>, vector<8x32xf32> -> vector<8x32xf32>
    %185 = arith.addf %1, %184 : vector<8x32xf32>
    %c0_79 = arith.constant 0 : index
    %c0_80 = arith.constant 0 : index
    %c0_81 = arith.constant 0 : index
    %186 = vector.load %arg12[%c0_79, %c0_80, %c0_81] : memref<1x8x32xf32, #tpu.memory_space<vmem>>, vector<1x8x32xf32>
    %187 = vector.shape_cast %186 : vector<1x8x32xf32> to vector<8x32xf32>
    %188 = vector.shape_cast %185 : vector<8x32xf32> to vector<1x8x32xf32>
    tpu.vector_store %arg12[%c0_79, %c0_80, %c0_81], %188 {strides = array<i32>} : memref<1x8x32xf32, #tpu.memory_space<vmem>>, vector<1x8x32xf32>,
    return
  }
  func.func @transform_0(%arg0: i32) -> (i32, i32, i32) {
    %c0_i32 = arith.constant 0 : i32
    %c0_i32_0 = arith.constant 0 : i32
    %c0_i32_1 = arith.constant 0 : i32
    return %arg0, %c0_i32, %c0_i32_0 : i32, i32, i32
  }
  func.func @transform_1(%arg0: i32) -> (i32, i32) {
    %c0_i32 = arith.constant 0 : i32
    %c0_i32_0 = arith.constant 0 : i32
    %c0_i32_1 = arith.constant 0 : i32
    return %c0_i32, %c0_i32_0 : i32, i32
  }
  func.func @transform_2(%arg0: i32) -> (i32, i32) {
    %c0_i32 = arith.constant 0 : i32
    %c0_i32_0 = arith.constant 0 : i32
    %c0_i32_1 = arith.constant 0 : i32
    return %c0_i32, %c0_i32_0 : i32, i32
  }
  func.func @transform_3(%arg0: i32) -> (i32, i32) {
    %c0_i32 = arith.constant 0 : i32
    %c0_i32_0 = arith.constant 0 : i32
    %c0_i32_1 = arith.constant 0 : i32
    return %c0_i32, %c0_i32_0 : i32, i32
  }
  func.func @transform_4(%arg0: i32) -> (i32, i32) {
    %c0_i32 = arith.constant 0 : i32
    %c0_i32_0 = arith.constant 0 : i32
    %c0_i32_1 = arith.constant 0 : i32
    return %c0_i32, %c0_i32_0 : i32, i32
  }
  func.func @transform_5(%arg0: i32) -> (i32, i32) {
    %c0_i32 = arith.constant 0 : i32
    %c0_i32_0 = arith.constant 0 : i32
    %c0_i32_1 = arith.constant 0 : i32
    return %c0_i32, %c0_i32_0 : i32, i32
  }
  func.func @transform_6(%arg0: i32) -> (i32, i32) {
    %c0_i32 = arith.constant 0 : i32
    %c0_i32_0 = arith.constant 0 : i32
    %c0_i32_1 = arith.constant 0 : i32
    return %c0_i32, %c0_i32_0 : i32, i32
  }
  func.func @transform_7(%arg0: i32) -> (i32, i32) {
    %c0_i32 = arith.constant 0 : i32
    %c0_i32_0 = arith.constant 0 : i32
    %c0_i32_1 = arith.constant 0 : i32
    return %c0_i32, %c0_i32_0 : i32, i32
  }
  func.func @transform_8(%arg0: i32) -> (i32, i32) {
    %c0_i32 = arith.constant 0 : i32
    %c0_i32_0 = arith.constant 0 : i32
    %c0_i32_1 = arith.constant 0 : i32
    return %c0_i32, %c0_i32_0 : i32, i32
  }
  func.func @transform_9(%arg0: i32) -> (i32, i32) {
    %c0_i32 = arith.constant 0 : i32
    %c0_i32_0 = arith.constant 0 : i32
    %c0_i32_1 = arith.constant 0 : i32
    return %c0_i32, %c0_i32_0 : i32, i32
  }
  func.func @transform_10(%arg0: i32) -> (i32, i32) {
    %c0_i32 = arith.constant 0 : i32
    %c0_i32_0 = arith.constant 0 : i32
    %c0_i32_1 = arith.constant 0 : i32
    return %c0_i32, %c0_i32_0 : i32, i32
  }
  func.func @transform_11(%arg0: i32) -> (i32, i32, i32) {
    %c0_i32 = arith.constant 0 : i32
    %c0_i32_0 = arith.constant 0 : i32
    %c0_i32_1 = arith.constant 0 : i32
    return %arg0, %c0_i32, %c0_i32_0 : i32, i32, i32
  }
}

</mosaic_0001>

<bundles_post_ra>
// kernel: mamba_forward.5
= control target key start
LH: loop header
LB: loop body
LE: loop exit
PB: predicated region body
PF: predicated region fallthrough
CT: control target
= control target key end

     0   :  { %s346_s17 = smov 0   ;;  %s369_s0 = inlined_call_operand.vmem [shape: f32[2,8,32], index: 0, kind: input, shape index: {}]   ;;  %s370_s1 = inlined_call_operand.vmem [shape: f32[1,32], index: 1, kind: input, shape index: {}]   ;;  %s371_s2 = inlined_call_operand.vmem [shape: f32[1,32], index: 2, kind: input, shape index: {}]   ;;  %s372_s3 = inlined_call_operand.<no memory space> [shape: f32[1,1], index: 3, kind: input, shape index: {}]   ;;  %s373_s4 = inlined_call_operand.vmem [shape: f32[2,8,1], index: 4, kind: output, shape index: {}]  }
   0x1   :  { %v9_v0 = vstv %s372_s3 }
   0x2   :  { %10 = vst [vmem:[#allocation2] sm:$0x1] %v9_v0 }
   0x3 LB: > { %s288_s18 = sadd.s32 4294967295, %s316_s17   ;;  %p292_p0 = scmp.ge.s32.totalorder %s316_s17, 1  ;;  %s316_s17 = sphi %s346_s17, %s16_s17  }
   0x4   : > { %p163_p1 = scmp.lt.s32.totalorder %s316_s17, 3 }
   0x6   : > { %p164_p2 = pnand %p292_p0, %p163_p1 }
   0x7   : > { %p187_p3 = scmp.lt.s32.totalorder (!%p164_p2), %s288_s18, 1  ;;  %vm197_vm0 = vcmask (!%p164_p2), 261120   ;;  %v295_v8 = vld [vmem:[%s370_s1] ss:$0 sm:$0xff] (!%p164_p2)  ;;  %vm233_vm1 = vcmask (!%p164_p2), 7168  }
   0x8   : > { %167 = sbr.rel (%p164_p2) target bundleno = 331 (0x14b), region = 36  ;;  %v296_v10 = vld [vmem:[%s371_s2] ss:$0 sm:$0xff] (!%p164_p2) }
   0x9   : > { %v297_v14 = vld [vmem:[#allocation2] ss:$0 sm:$0xff] (!%p164_p2) }
   0xf   : > { %s375_s18 = smov (!%p187_p3, %s288_s18), 1 }
  0x10   : > { %s293_s19 = sshll.u32 %s375_s18, 3 }
  0x11   : > { %s190_s21 = scalar_lea.vmem %s369_s0, %s293_s19  ;;  %s194_s28 = scalar_lea.vmem %s373_s4, %s293_s19 }
  0x12   : > { %v195_v1 = vld [vmem:[%s190_s21] sm:$0xff] }
  0x13   : > { %v196_v2 = vmul.f32 %v195_v1, %v195_v1 }
  0x15   : > { %v198_v3 = vsel %vm197_vm0, %v196_v2, 0.0 }
  0x16   : > { %199 = vadd.xlane.f32.xlu0 %v198_v3 }
  0xa3   : > { %v200_v4 = vpop.xlane.xlu0 %199 }
  0xa4   : > { %v202_v5 = vmul.f32 0.03125, %v200_v4 }
  0xa6   : > { %v203_v6 = vadd.f32 1e-05, %v202_v5 }
  0xa8   : > { %308 = vrsqrt.f32 %v203_v6 }
  0xb2   : > { %v309_v7 = vpop.eup %308 }
  0xb3   : > { %v205_v9 = vmul.f32 %v309_v7, %v195_v1 }
  0xb5   : > { %v213_v11 = vmul.f32 %v295_v8, %v205_v9 }
  0xb7   : > { %v221_v12 = vmul.f32 %v296_v10, %v213_v11 }
  0xb9   : > { %v222_v13 = vsel %vm197_vm0, %v221_v12, 0.0 }
  0xba   : > { %223 = vadd.xlane.f32.xlu0 %v222_v13 }
 0x147   : > { %v224_v15 = vpop.xlane.xlu0 %223 }
 0x148   : > { %v232_v16 = vadd.f32 %v297_v14, %v224_v15 }
 0x14a   : > { %234 = vst.msk [vmem:[%s194_s28] sm:$0xff] %vm233_vm1, %v232_v16 }
 0x14b PF: > { %s16_s17 = sadd.s32 1, %s316_s17  }
 0x14c   : > { %p13_p4 = scmp.ge.s32.totalorder %s16_s17, 4  }
 0x14e   :  { %15 = sbr.rel (!%p13_p4) target bundleno = 3 (0x3), region = 66 }

// kernel: mamba_forward.3
= control target key start
LH: loop header
LB: loop body
LE: loop exit
PB: predicated region body
PF: predicated region fallthrough
CT: control target
= control target key end

     0   :  { %s2748_s17 = smov 0   ;;  %s2980_s0 = inlined_call_operand.vmem [shape: f32[2,8,32], index: 0, kind: input, shape index: {}]   ;;  %s2981_s1 = inlined_call_operand.vmem [shape: f32[1,32], index: 1, kind: input, shape index: {}]   ;;  %s2982_s2 = inlined_call_operand.vmem [shape: bf16[32,128], index: 2, kind: input, shape index: {}]   ;;  %s2983_s3 = inlined_call_operand.vmem [shape: f32[4,64], index: 3, kind: input, shape index: {}]   ;;  %s2984_s4 = inlined_call_operand.vmem [shape: f32[1,64], index: 4, kind: input, shape index: {}]   ;;  %s2985_s5 = inlined_call_operand.vmem [shape: bf16[64,16], index: 5, kind: input, shape index: {}]   ;;  %s2986_s6 = inlined_call_operand.vmem [shape: bf16[64,64], index: 6, kind: input, shape index: {}]   ;;  %s2987_s7 = inlined_call_operand.vmem [shape: f32[1,64], index: 7, kind: input, shape index: {}]   ;;  %s2988_s8 = inlined_call_operand.vmem [shape: f32[8,64], index: 8, kind: input, shape index: {}]   ;;  %s2989_s9 = inlined_call_operand.vmem [shape: f32[1,64], index: 9, kind: input, shape index: {}]   ;;  %s2990_s10 = inlined_call_operand.vmem [shape: bf16[64,32], index: 10, kind: input, shape index: {}]   ;;  %s2991_s11 = inlined_call_operand.vmem [shape: f32[2,8,32], index: 11, kind: output, shape index: {}]  }
   0x1 LB: > { %s2385_s18 = sadd.s32 4294967295, %s2682_s17   ;;  %p2389_p0 = scmp.ge.s32.totalorder %s2682_s17, 1  ;;  %s2682_s17 = sphi %s2748_s17, %s21_s17  }
   0x2   : > { %p336_p1 = scmp.lt.s32.totalorder %s2682_s17, 3 }
   0x4   : > { %p337_p2 = pnand %p2389_p0, %p336_p1 }
   0x5   : > { %p374_p3 = scmp.lt.s32.totalorder (!%p337_p2), %s2385_s18, 1  ;;  %vm385_vm0 = vcmask (!%p337_p2), 261120   ;;  %v2632_v3 = vld [vmem:[%s2982_s2] sm:$0xff] (!%p337_p2)   ;;  %v2684_v4 = vmov (!%p337_p2), 0.0   ;;  %vm2685_vm1 = vmmov (!%p337_p2), 0   ;;  %v2633_v5 = vld [vmem:[%s2982_s2 + $0x8] sm:$0xff] (!%p337_p2)  }
   0x6   : > { %340 = sbr.rel (%p337_p2) target bundleno = 1468 (0x5bc), region = 64  ;;  %2496 = vmatprep.subr.bf16.mxu1 (!%p337_p2), %v2684_v4  ;;  %2500 = vmatprep.mubr.msk.bf16.mxu1 (!%p337_p2), %vm2685_vm1, %v2684_v4  ;;  %v2392_v10 = vld [vmem:[%s2981_s1] ss:$0 sm:$0xff] (!%p337_p2)  ;;  %vm462_vm2 = vcmask (!%p337_p2), 523264   ;;  %v2636_v16 = vld [vmem:[%s2985_s5 + $0x8] sm:$0xff] (!%p337_p2)   ;;  %v2638_v18 = vld [vmem:[%s2985_s5 + $0x10] sm:$0xff] (!%p337_p2)  }
   0x7   : > { %2497 = vmatpush3.bf16.msra.mxu1 (!%p337_p2), %v2632_v3  ;;  %2516 = vmatprep.subr.bf16.mxu0 (!%p337_p2), %v2684_v4  ;;  %463 = vst.msk [vmem:[#allocation2] sm:$0xff] (!%p337_p2), %vm462_vm2, %v2684_v4  ;;  %v2634_v14 = vld [vmem:[%s2985_s5] sm:$0xff] (!%p337_p2)   ;;  %v2637_v17 = vld [vmem:[%s2986_s6 + $0x8] sm:$0xff] (!%p337_p2)   ;;  %v2639_v19 = vld [vmem:[%s2986_s6 + $0x10] sm:$0xff] (!%p337_p2)   ;;  %vm720_vm3 = vcmask (!%p337_p2), 1040384   ;;  %s2686_s25 = smov (!%p337_p2), 120  }
   0x8   : > { %2498 = vmatprep.subr.bf16.mxu1 (!%p337_p2), %v2684_v4  ;;  %2524 = vmatprep.mubr.msk.bf16.mxu0 (!%p337_p2), %vm2685_vm1, %v2684_v4  ;;  %v2635_v15 = vld [vmem:[%s2986_s6] sm:$0xff] (!%p337_p2)   ;;  %v2640_v20 = vld [vmem:[%s2985_s5 + $0x18] sm:$0xff] (!%p337_p2)   ;;  %s2687_s26 = smov (!%p337_p2), 64   ;;  %vm716_vm4 = vcmask (!%p337_p2), 7168   ;;  %vm799_vm5 = vcmask (!%p337_p2), 64512   ;;  %vm872_vm6 = vcmask (!%p337_p2), 516096  }
   0x9   : > { %2517 = vmatpush3.bf16.msra.mxu0 (!%p337_p2), %v2635_v15  ;;  %v2641_v21 = vld [vmem:[%s2986_s6 + $0x18] sm:$0xff] (!%p337_p2)   ;;  %v2396_v26 = vld [vmem:[%s2983_s3] ss:$0 sm:$0xff] (!%p337_p2)  ;;  %v2398_v27 = vld [vmem:[%s2983_s3 + $0x1] ss:$0 sm:$0xff] (!%p337_p2) }
   0xa   : > { %2518 = vmatprep.subr.bf16.mxu0 (!%p337_p2), %v2684_v4  ;;  %v2397_v28 = vld [vmem:[%s2984_s4] ss:$0 sm:$0xff] (!%p337_p2)  ;;  %v2399_v33 = vld [vmem:[%s2983_s3 + $0x2] ss:$0 sm:$0xff] (!%p337_p2)  ;;  %v2400_v37 = vld [vmem:[%s2983_s3 + $0x3] ss:$0 sm:$0xff] (!%p337_p2) }
   0xb   : > { %2499 = vmatpush3.bf16.msra.mxu1 (!%p337_p2), %v2633_v5  ;;  %v2407_v49 = vld [vmem:[%s2987_s7] ss:$0 sm:$0xff] (!%p337_p2) }
   0xc   : > { %2504 = vmatprep.subr.bf16.mxu1 (!%p337_p2), %v2684_v4 }
   0xd   : > { %s2993_s18 = smov (!%p374_p3, %s2385_s18), 1  ;;  %2519 = vmatpush3.bf16.msra.mxu0 %v2637_v17 }
   0xe   : > { %s2390_s19 = sshll.u32 %s2993_s18, 3  ;;  %2520 = vmatprep.subr.bf16.mxu0 %v2684_v4 }
   0xf   : > { %s377_s22 = scalar_lea.vmem %s2980_s0, %s2390_s19 }
  0x10   : > { %v2764_v0 = vld [vmem:[%s377_s22] sm:$0xff] }
  0x11   : > { %v384_v1 = vmul.f32 %v2764_v0, %v2764_v0  ;;  %2521 = vmatpush3.bf16.msra.mxu0 %v2639_v19 }
  0x12   : > { %2522 = vmatprep.subr.bf16.mxu0 %v2684_v4 }
  0x13   : > { %v386_v2 = vsel %vm385_vm0, %v384_v1, 0.0 }
  0x14   : > { %387 = vadd.xlane.f32.xlu0 %v386_v2 }
  0x15   : > { %2523 = vmatpush3.bf16.msra.mxu0 %v2641_v21 }
  0x16   : > { %2538 = vmatprep.subr.mxu0 %v2684_v4 }
  0xa1   : > { %v388_v6 = vpop.xlane.xlu0 %387 }
  0xa2   : > { %v390_v7 = vmul.f32 0.03125, %v388_v6 }
  0xa4   : > { %v391_v8 = vadd.f32 1e-05, %v390_v7 }
  0xa6   : > { %2646 = vrsqrt.f32 %v391_v8 }
  0xb0   : > { %v2647_v9 = vpop.eup %2646 }
  0xb1   : > { %v393_v11 = vmul.f32 %v2647_v9, %v2764_v0 }
  0xb3   : > { %v401_v12 = vmul.f32 %v2392_v10, %v393_v11 }
  0xb5   : > { %v402_v13 = vpack.c.bf16 %v401_v12, %v401_v12 }
  0xb7   : > { %2501 = vmatmul.mubr.msk.bf16.vlgmr.msra.gmra.mrb[0].mxu1 %vm385_vm0, %v402_v13 }
  0xb8   : > { %2512 = vmatprep.mubr.msk.bf16.mxu1 %vm2685_vm1, %v2684_v4  ;;  %2505 = vmatpush3.bf16.msra.mxu1 %v2634_v14 }
  0xb9   : > { %2506 = vmatprep.subr.bf16.mxu1 %v2684_v4 }
  0xbc   : > { %2507 = vmatpush3.bf16.msra.mxu1 %v2636_v16 }
  0xbd   : > { %2508 = vmatprep.subr.bf16.mxu1 %v2684_v4 }
  0xc0   : > { %2509 = vmatpush3.bf16.msra.mxu1 %v2638_v18 }
  0xc1   : > { %2510 = vmatprep.subr.bf16.mxu1 %v2684_v4 }
  0xc4   : > { %2511 = vmatpush3.bf16.msra.mxu1 %v2640_v20 }
  0xc5   : > { %2528 = vmatprep.subr.mxu1 %v2684_v4 }
 0x18a   : > { %v2824_v22 = vpop.f32.mrb[0].mxu1 }
 0x18b   : > { %464 = vst.msk [vmem:[#allocation2 + $0x8] sm:$0xff] %vm462_vm2, %v2824_v22  ;;  %v2502_v23 = vpop.f32.mrb[1].mxu1  ;;  %v2438_v15 = vmul.f32 -1.442695, %v2824_v22 }
 0x18c   : > { %v459_v24 = vpop.f32.mrb[2].mxu1 }
 0x18d   : > { %v2503_v25 = vpop.f32.mrb[3].mxu1 }
 0x192   : > { %v466_v29 = vld [vmem:[#allocation2 + $0x5] sm:$0xff] }
 0x193   : > { %v480_v30 = vld [vmem:[#allocation2 + $0x6] sm:$0xff]  ;;  %v472_v31 = vmul.f32 %v2396_v26, %v466_v29 }
 0x194   : > { %v488_v32 = vld [vmem:[#allocation2 + $0x7] sm:$0xff]  ;;  %v486_v35 = vmul.f32 %v2398_v27, %v480_v30 }
 0x195   : > { %v479_v34 = vadd.f32 %v2397_v28, %v472_v31  ;;  %v496_v36 = vld [vmem:[#allocation2 + $0x8] sm:$0xff]  ;;  %v494_v39 = vmul.f32 %v2399_v33, %v488_v32 }
 0x196   : > { %v502_v41 = vmul.f32 %v2400_v37, %v496_v36 }
 0x197   : > { %v487_v38 = vadd.f32 %v486_v35, %v479_v34  ;;  %v677_v34 = vlaneseq }
 0x199   : > { %v495_v40 = vadd.f32 %v494_v39, %v487_v38  ;;  %v678_v35 = vshrl.u32 %v677_v34, 7  ;;  %v675_v38 = vld [vmem:[%s2988_s8] sm:$0xff] }
 0x19b   : > { %v503_v42 = vadd.f32 %v502_v41, %v495_v40  ;;  %v679_v36 = vsub.s32 0, %v678_v35  ;;  %v876_v39 = vsub.s32 1, %v678_v35 }
 0x19d   : > { %v2401_v43 = vmul.f32 -1.442695, %v503_v42 }
 0x19f   : > { %2648 = vpow2.f32 %v2401_v43 }
 0x1a9   : > { %v2649_v44 = vpop.eup %2648 }
 0x1aa   : > { %v507_v45 = vadd.f32 1.0, %v2649_v44 }
 0x1ac   : > { %2650 = vrcp.f32 %v507_v45 }
 0x1b6   : > { %v2651_v46 = vpop.eup %2650 }
 0x1b7   : > { %v2843_v47 = vmul.f32 %v2651_v46, %v503_v42  ;;  %v1070_v42 = vsub.s32 2, %v678_v35  ;;  %v1264_v46 = vsub.s32 3, %v678_v35 }
 0x1b9   : > { %v511_v48 = vpack.c.bf16 %v2843_v47, %v2843_v47 }
 0x1bb   : > { %2513 = vmatmul.mubr.msk.bf16.vlgmr.msra.gmra.mrb[4].mxu1 %vm462_vm2, %v511_v48  ;;  %2525 = vmatmul.mubr.msk.bf16.vlgmr.msra.gmra.mrb[0].mxu0 %vm462_vm2, %v511_v48 }
 0x1bc   : > { %2530 = vmatprep.mubr.msk.f32.mxu1 %vm2685_vm1, %v2684_v4  ;;  %2540 = vmatprep.mubr.msk.f32.mxu0 %vm2685_vm1, %v2684_v4 }
 0x28e   : > { %v581_v50 = vpop.f32.mrb[4].mxu1  ;;  %v660_v51 = vpop.f32.mrb[0].mxu0 }
 0x28f   : > { %v661_v52 = vadd.f32 %v2407_v49, %v660_v51  ;;  %v2526_v53 = vpop.f32.mrb[1].mxu0  ;;  %684 = vxpose.xlu0.b32.start.end [1/1] (short) (narrow) %v581_v50, 8  ;;  %v2514_v54 = vpop.f32.mrb[5].mxu1  ;;  %v881_v55 = vrot.slane %v581_v50, 1  ;;  %v1075_v62 = vrot.slane %v581_v50, 2  ;;  %v1269_v1 = vrot.slane %v581_v50, 3 }
 0x290   : > { %v584_v56 = vpop.f32.mrb[6].mxu1  ;;  %v663_v57 = vpop.f32.mrb[2].mxu0  ;;  %v1463_v2 = vrot.slane %v581_v50, 4  ;;  %v1657_v3 = vrot.slane %v581_v50, 5  ;;  %v1851_v7 = vrot.slane %v581_v50, 6  ;;  %v2045_v8 = vrot.slane %v581_v50, 7 }
 0x291   : > { %v667_v58 = vand.u32 2147483647, %v661_v52  ;;  %v2527_v59 = vpop.f32.mrb[3].mxu0  ;;  %883 = vxpose.xlu1.b32.start.end [1/1] (short) (narrow) %v881_v55, 8  ;;  %v2515_v60 = vpop.f32.mrb[7].mxu1  ;;  %v666_v10 = vmax.f32 %v661_v52, 0.0 }
 0x292   : > { %v1458_v51 = vsub.s32 4, %v678_v35  ;;  %v1652_v52 = vsub.s32 5, %v678_v35  ;;  %v1846_v57 = vsub.s32 6, %v678_v35 }
 0x293   : > { %v668_v61 = vsub.f32 0.0, %v667_v58 }
 0x295   : > { %v669_v63 = vmul.f32 1.442695, %v668_v61  ;;  %1077 = vxpose.xlu1.b32.start.end [1/1] (short) (narrow) %v1075_v62, 8 }
 0x297   : > { %2652 = vpow2.f32 %v669_v63  ;;  %v2040_v63 = vsub.s32 7, %v678_v35 }
 0x299   : > { %1271 = vxpose.xlu1.b32.start.end [1/1] (short) (narrow) %v1269_v1, 8 }
 0x29d   : > { %1465 = vxpose.xlu1.b32.start.end [1/1] (short) (narrow) %v1463_v2, 8 }
 0x2a1   : > { %v2653_v5 = vpop.eup %2652  ;;  %1659 = vxpose.xlu1.b32.start.end [1/1] (short) (narrow) %v1657_v3, 8 }
 0x2a2   : > { %v671_v6 = vadd.f32 1.0, %v2653_v5 }
 0x2a4   : > { %2654 = vlog2.f32 %v671_v6 }
 0x2a5   : > { %1853 = vxpose.xlu1.b32.start.end [1/1] (short) (narrow) %v1851_v7, 8  ;;  %2656 = vpow2.f32 %v2438_v15 }
 0x2a9   : > { %2047 = vxpose.xlu1.b32.start.end [1/1] (short) (narrow) %v2045_v8, 8 }
 0x2ae   : > { %v2655_v9 = vpop.eup %2654 }
 0x2af   : > { %v673_v11 = vmul.f32 0.6931472, %v2655_v9  ;;  %v2657_v16 = vpop.eup %2656 }
 0x2b0   : > { %v2245_v17 = vadd.f32 1.0, %v2657_v16 }
 0x2b1   : > { %v2856_v12 = vadd.f32 %v673_v11, %v666_v10 }
 0x2b2   : > { %2658 = vrcp.f32 %v2245_v17 }
 0x2b3   : > { %v676_v13 = vmul.f32 %v2856_v12, %v2843_v47  ;;  %v680_v37 = vrot.slane %v2856_v12, %v679_v36  ;;  %v877_v41 = vrot.slane %v2856_v12, %v876_v39  ;;  %v1071_v45 = vrot.slane %v2856_v12, %v1070_v42 }
 0x2b4   : > { %v1653_v61 = vrot.slane %v2856_v12, %v1652_v52  ;;  %v1847_v5 = vrot.slane %v2856_v12, %v1846_v57  ;;  %v2041_v16 = vrot.slane %v2856_v12, %v2040_v63  ;;  %v2642_v57 = vld [vmem:[%s2990_s10] sm:$0xff]  }
 0x2b5   : > { %2529 = vmatpush3.msk.msra.mxu1 %vm720_vm3, %v676_v13  ;;  %v915_v14 = vrot.slane %v676_v13, 1  ;;  %v1109_v23 = vrot.slane %v676_v13, 2  ;;  %v1303_v24 = vrot.slane %v676_v13, 3  ;;  %v1497_v26 = vrot.slane %v676_v13, 4 }
 0x2b6   : > { %2533 = vmatprep.subr.mxu1 %v2684_v4  ;;  %v1691_v28 = vrot.slane %v676_v13, 5  ;;  %v1885_v30 = vrot.slane %v676_v13, 6  ;;  %v2079_v32 = vrot.slane %v676_v13, 7  ;;  %v681_v40 = vmul.f32 %v680_v37, %v675_v38 }
 0x2b7   : > { %2539 = vmatpush3.msk.msra.mxu0 %vm720_vm3, %v915_v14  ;;  %v878_v44 = vmul.f32 %v877_v41, %v675_v38  ;;  %v1072_v49 = vmul.f32 %v1071_v45, %v675_v38  ;;  %v1848_v15 = vmul.f32 %v1847_v5, %v675_v38 }
 0x2b8   : > { %993 = vrot.lane.b32.xlu0 %v881_v55, %s2686_s25  ;;  %2548 = vmatprep.subr.mxu0 %v2684_v4  ;;  %v682_v43 = vmul.f32 1.442695, %v681_v40  ;;  %v1459_v55 = vrot.slane %v2856_v12, %v1458_v51 }
 0x2b9   : > { %v879_v48 = vmul.f32 1.442695, %v878_v44  ;;  %v1073_v53 = vmul.f32 1.442695, %v1072_v49 }
 0x2ba   : > { %2660 = vpow2.f32 %v682_v43  ;;  %v1460_v60 = vmul.f32 %v1459_v55, %v675_v38 }
 0x2bb   : > { %2662 = vpow2.f32 %v879_v48 }
 0x2bc   : > { %v2659_v18 = vpop.eup %2658  ;;  %2664 = vpow2.f32 %v1073_v53 }
 0x2bd   : > { %v2248_v19 = vmul.f32 %v2659_v18, %v2824_v22 }
 0x2c4   : > { %v2661_v58 = vpop.eup %2660 }
 0x2c5   : > { %v2663_v9 = vpop.eup %2662 }
 0x2c6   : > { %v2665_v18 = vpop.eup %2664 }
 0x2c7   : > { %797 = vrot.lane.b32.xlu1 %v581_v50, %s2686_s25  ;;  %v1265_v50 = vrot.slane %v2856_v12, %v1264_v46 }
 0x2c9   : > { %v1266_v54 = vmul.f32 %v1265_v50, %v675_v38 }
 0x2cb   : > { %1187 = vrot.lane.b32.xlu1 %v1075_v62, %s2686_s25  ;;  %v1267_v59 = vmul.f32 1.442695, %v1266_v54  ;;  %v794_v62 = vmul.f32 0.0, %v2661_v58  ;;  %v2643_v58 = vld [vmem:[%s2990_s10 + $0x8] sm:$0xff]  }
 0x2cd   : > { %2666 = vpow2.f32 %v1267_v59  ;;  %v2644_v59 = vld [vmem:[%s2990_s10 + $0x10] sm:$0xff]  }
 0x2cf   : > { %1381 = vrot.lane.b32.xlu1 %v1269_v1, %s2686_s25 }
 0x2d3   : > { %1575 = vrot.lane.b32.xlu1 %v1463_v2, %s2686_s25  ;;  %v1461_v2 = vmul.f32 1.442695, %v1460_v60  ;;  %v2645_v60 = vld [vmem:[%s2990_s10 + $0x18] sm:$0xff]  }
 0x2d5   : > { %2668 = vpow2.f32 %v1461_v2 }
 0x2d7   : > { %1769 = vrot.lane.b32.xlu1 %v1657_v3, %s2686_s25  ;;  %v1654_v3 = vmul.f32 %v1653_v61, %v675_v38  ;;  %v2667_v12 = vpop.eup %2666 }
 0x2d9   : > { %v1655_v14 = vmul.f32 1.442695, %v1654_v3 }
 0x2db   : > { %1963 = vrot.lane.b32.xlu1 %v1851_v7, %s2686_s25  ;;  %2670 = vpow2.f32 %v1655_v14 }
 0x2df   : > { %2157 = vrot.lane.b32.xlu1 %v2045_v8, %s2686_s25  ;;  %s381_s25 = scalar_lea.vmem %s2991_s11, %s2390_s19 }
 0x2e3   : > { %2250 = vrot.lane.b32.xlu1 %v2248_v19, %s2687_s26 }
 0x30f   : > { %v700_v20 = vpop.trf.xlu0 }
 0x310   : > { %2531 = vmatmul.mubr.msk.f32.vlgmr.msra.gmra.mrb[8].mxu1 %vm716_vm4, %v700_v20 }
 0x311   : > { %v899_v21 = vpop.trf.xlu1  ;;  %2535 = vmatprep.mubr.msk.f32.mxu1 %vm2685_vm1, %v2684_v4 }
 0x312   : > { %2541 = vmatmul.mubr.msk.f32.vlgmr.msra.gmra.mrb[4].mxu0 %vm716_vm4, %v899_v21 }
 0x313   : > { %2549 = vmatpush3.msk.msra.mxu0 %vm720_vm3, %v1109_v23  ;;  %2550 = vmatprep.mubr.msk.f32.mxu0 %vm2685_vm1, %v2684_v4 }
 0x314   : > { %2558 = vmatprep.subr.mxu0 %v2684_v4 }
 0x315   : > { %v1093_v22 = vpop.trf.xlu1 }
 0x316   : > { %2551 = vmatmul.mubr.msk.f32.vlgmr.msra.gmra.mrb[6].mxu0 %vm716_vm4, %v1093_v22 }
 0x317   : > { %2559 = vmatpush3.msk.msra.mxu0 %vm720_vm3, %v1303_v24  ;;  %2560 = vmatprep.mubr.msk.f32.mxu0 %vm2685_vm1, %v2684_v4  ;;  %v1849_v24 = vmul.f32 1.442695, %v1848_v15  ;;  %v2437_v15 = vld [vmem:[%s2989_s9] ss:$0 sm:$0xff] }
 0x318   : > { %2568 = vmatprep.subr.mxu0 %v2684_v4 }
 0x319   : > { %v1287_v25 = vpop.trf.xlu1  ;;  %2672 = vpow2.f32 %v1849_v24 }
 0x31a   : > { %2561 = vmatmul.mubr.msk.f32.vlgmr.msra.gmra.mrb[8].mxu0 %vm716_vm4, %v1287_v25  ;;  %v2042_v25 = vmul.f32 %v2041_v16, %v675_v38  ;;  %v2240_v16 = vmul.f32 %v2437_v15, %v2843_v47 }
 0x31b   : > { %2569 = vmatpush3.msk.msra.mxu0 %vm720_vm3, %v1497_v26  ;;  %2570 = vmatprep.mubr.msk.f32.mxu0 %vm2685_vm1, %v2684_v4 }
 0x31c   : > { %2578 = vmatprep.subr.mxu0 %v2684_v4 }
 0x31d   : > { %v1481_v27 = vpop.trf.xlu1 }
 0x31e   : > { %2571 = vmatmul.mubr.msk.f32.vlgmr.msra.gmra.mrb[10].mxu0 %vm716_vm4, %v1481_v27 }
 0x31f   : > { %2579 = vmatpush3.msk.msra.mxu0 %vm720_vm3, %v1691_v28  ;;  %2580 = vmatprep.mubr.msk.f32.mxu0 %vm2685_vm1, %v2684_v4 }
 0x320   : > { %2588 = vmatprep.subr.mxu0 %v2684_v4 }
 0x321   : > { %v1675_v29 = vpop.trf.xlu1 }
 0x322   : > { %2581 = vmatmul.mubr.msk.f32.vlgmr.msra.gmra.mrb[12].mxu0 %vm716_vm4, %v1675_v29 }
 0x323   : > { %2589 = vmatpush3.msk.msra.mxu0 %vm720_vm3, %v1885_v30  ;;  %2590 = vmatprep.mubr.msk.f32.mxu0 %vm2685_vm1, %v2684_v4  ;;  %v2043_v30 = vmul.f32 1.442695, %v2042_v25 }
 0x324   : > { %2598 = vmatprep.subr.mxu0 %v2684_v4 }
 0x325   : > { %v1869_v31 = vpop.trf.xlu1  ;;  %2674 = vpow2.f32 %v2043_v30 }
 0x326   : > { %2591 = vmatmul.mubr.msk.f32.vlgmr.msra.gmra.mrb[14].mxu0 %vm716_vm4, %v1869_v31 }
 0x327   : > { %2599 = vmatpush3.msk.msra.mxu0 %vm720_vm3, %v2079_v32  ;;  %2600 = vmatprep.mubr.msk.f32.mxu0 %vm2685_vm1, %v2684_v4 }
 0x328   : > { %2608 = vmatprep.subr.bf16.mxu0 %v2684_v4 }
 0x329   : > { %v2063_v33 = vpop.trf.xlu1 }
 0x32a   : > { %2601 = vmatmul.mubr.msk.f32.vlgmr.msra.gmra.mrb[16].mxu0 %vm716_vm4, %v2063_v33  ;;  %v994_v19 = vpop.permute.xlu0 %993  ;;  %v2669_v33 = vpop.eup %2668 }
 0x32b   : > { %2616 = vmatprep.mubr.msk.bf16.mxu0 %vm2685_vm1, %v2684_v4  ;;  %v2671_v38 = vpop.eup %2670  ;;  %2609 = vmatpush3.bf16.msra.mxu0 %v2642_v57 }
 0x32c   : > { %v2673_v44 = vpop.eup %2672  ;;  %2610 = vmatprep.subr.bf16.mxu0 %v2684_v4 }
 0x32f   : > { %v2675_v51 = vpop.eup %2674  ;;  %2611 = vmatpush3.bf16.msra.mxu0 %v2643_v58 }
 0x330   : > { %2612 = vmatprep.subr.bf16.mxu0 %v2684_v4 }
 0x333   : > { %2613 = vmatpush3.bf16.msra.mxu0 %v2644_v59 }
 0x334   : > { %2614 = vmatprep.subr.bf16.mxu0 %v2684_v4 }
 0x337   : > { %2615 = vmatpush3.bf16.msra.mxu0 %v2645_v60 }
 0x339   : > { %v798_v56 = vpop.permute.xlu1 %797 }
 0x33d   : > { %v1188_v6 = vpop.permute.xlu1 %1187 }
 0x341   : > { %v1382_v21 = vpop.permute.xlu1 %1381 }
 0x345   : > { %v1576_v31 = vpop.permute.xlu1 %1575 }
 0x349   : > { %v1770_v40 = vpop.permute.xlu1 %1769 }
 0x34d   : > { %v1964_v49 = vpop.permute.xlu1 %1963 }
 0x3e3   : > { %v790_v1 = vpop.f32.mrb[8].mxu1 }
 0x3e4   : > { %v795_v7 = vadd.f32 %v794_v62, %v790_v1  ;;  %v2532_v8 = vpop.f32.mrb[9].mxu1 }
 0x3e5   : > { %v987_v10 = vpop.f32.mrb[4].mxu0 }
 0x3e6   : > { %2534 = vmatpush3.msra.mxu1 %v795_v7  ;;  %v991_v11 = vmul.f32 %v2663_v9, %v795_v7  ;;  %v2542_v13 = vpop.f32.mrb[5].mxu0 }
 0x3e7   : > { %2536 = vmatmul.mubr.msk.f32.vlgmr.msra.gmra.mrb[10].mxu1 %vm799_vm5, %v798_v56  ;;  %2543 = vmatprep.subr.mxu1 %v2684_v4  ;;  %v2158_v56 = vpop.permute.xlu1 %2157 }
 0x3e8   : > { %v992_v17 = vadd.f32 %v991_v11, %v987_v10  ;;  %2545 = vmatprep.mubr.msk.f32.mxu1 %vm2685_vm1, %v2684_v4 }
 0x3e9   : > { %v1181_v20 = vpop.f32.mrb[6].mxu0 }
 0x3ea   : > { %2544 = vmatpush3.msra.mxu1 %v992_v17  ;;  %v1185_v23 = vmul.f32 %v2665_v18, %v992_v17  ;;  %v2552_v22 = vpop.f32.mrb[7].mxu0 }
 0x3eb   : > { %2546 = vmatmul.mubr.msk.f32.vlgmr.msra.gmra.mrb[12].mxu1 %vm799_vm5, %v994_v19  ;;  %2553 = vmatprep.subr.mxu1 %v2684_v4  ;;  %v2251_v19 = vpop.permute.xlu1 %2250 }
 0x3ec   : > { %v1186_v26 = vadd.f32 %v1185_v23, %v1181_v20  ;;  %2555 = vmatprep.mubr.msk.f32.mxu1 %vm2685_vm1, %v2684_v4 }
 0x3ed   : > { %v1375_v27 = vpop.f32.mrb[8].mxu0 }
 0x3ee   : > { %2554 = vmatpush3.msra.mxu1 %v1186_v26  ;;  %v1379_v28 = vmul.f32 %v2667_v12, %v1186_v26  ;;  %v2562_v29 = vpop.f32.mrb[9].mxu0 }
 0x3ef   : > { %2556 = vmatmul.mubr.msk.f32.vlgmr.msra.gmra.mrb[14].mxu1 %vm799_vm5, %v1188_v6  ;;  %2563 = vmatprep.subr.mxu1 %v2684_v4 }
 0x3f0   : > { %v1380_v32 = vadd.f32 %v1379_v28, %v1375_v27  ;;  %2565 = vmatprep.mubr.msk.f32.mxu1 %vm2685_vm1, %v2684_v4 }
 0x3f1   : > { %v1569_v34 = vpop.f32.mrb[10].mxu0 }
 0x3f2   : > { %2564 = vmatpush3.msra.mxu1 %v1380_v32  ;;  %v1573_v35 = vmul.f32 %v2669_v33, %v1380_v32  ;;  %v2572_v36 = vpop.f32.mrb[11].mxu0 }
 0x3f3   : > { %2566 = vmatmul.mubr.msk.f32.vlgmr.msra.gmra.mrb[16].mxu1 %vm799_vm5, %v1382_v21  ;;  %2573 = vmatprep.subr.mxu1 %v2684_v4 }
 0x3f4   : > { %v1574_v37 = vadd.f32 %v1573_v35, %v1569_v34  ;;  %2575 = vmatprep.mubr.msk.f32.mxu1 %vm2685_vm1, %v2684_v4 }
 0x3f5   : > { %v1763_v39 = vpop.f32.mrb[12].mxu0 }
 0x3f6   : > { %2574 = vmatpush3.msra.mxu1 %v1574_v37  ;;  %v1767_v41 = vmul.f32 %v2671_v38, %v1574_v37  ;;  %v2582_v42 = vpop.f32.mrb[13].mxu0 }
 0x3f7   : > { %2576 = vmatmul.mubr.msk.f32.vlgmr.msra.gmra.mrb[18].mxu1 %vm799_vm5, %v1576_v31  ;;  %2583 = vmatprep.subr.mxu1 %v2684_v4 }
 0x3f8   : > { %v1768_v43 = vadd.f32 %v1767_v41, %v1763_v39  ;;  %2585 = vmatprep.mubr.msk.f32.mxu1 %vm2685_vm1, %v2684_v4 }
 0x3f9   : > { %v1957_v45 = vpop.f32.mrb[14].mxu0 }
 0x3fa   : > { %2584 = vmatpush3.msra.mxu1 %v1768_v43  ;;  %v1961_v46 = vmul.f32 %v2673_v44, %v1768_v43  ;;  %v2592_v48 = vpop.f32.mrb[15].mxu0 }
 0x3fb   : > { %2586 = vmatmul.mubr.msk.f32.vlgmr.msra.gmra.mrb[20].mxu1 %vm799_vm5, %v1770_v40  ;;  %2593 = vmatprep.subr.mxu1 %v2684_v4 }
 0x3fc   : > { %v1962_v50 = vadd.f32 %v1961_v46, %v1957_v45  ;;  %2595 = vmatprep.mubr.msk.f32.mxu1 %vm2685_vm1, %v2684_v4 }
 0x3fd   : > { %v2151_v52 = vpop.f32.mrb[16].mxu0 }
 0x3fe   : > { %2594 = vmatpush3.msra.mxu1 %v1962_v50  ;;  %v2155_v53 = vmul.f32 %v2675_v51, %v1962_v50  ;;  %v2602_v54 = vpop.f32.mrb[17].mxu0 }
 0x3ff   : > { %2596 = vmatmul.mubr.msk.f32.vlgmr.msra.gmra.mrb[22].mxu1 %vm799_vm5, %v1964_v49  ;;  %2603 = vmatprep.subr.mxu1 %v2684_v4 }
 0x400   : > { %v2156_v55 = vadd.f32 %v2155_v53, %v2151_v52  ;;  %2605 = vmatprep.mubr.msk.f32.mxu1 %vm2685_vm1, %v2684_v4 }
 0x402   : > { %2604 = vmatpush3.msra.mxu1 %v2156_v55 }
 0x403   : > { %2606 = vmatmul.mubr.msk.f32.vlgmr.msra.gmra.mrb[24].mxu1 %vm799_vm5, %v2158_v56 }
 0x4ba   : > { %v868_v61 = vpop.f32.mrb[10].mxu1 }
 0x4bb   : > { %873 = vst.msk [vmem:[#allocation3] sm:$0x1] %vm872_vm6, %v868_v61  ;;  %v2537_v62 = vpop.f32.mrb[11].mxu1 }
 0x4be   : > { %v1063_v63 = vpop.f32.mrb[12].mxu1 }
 0x4bf   : > { %1067 = vst.msk [vmem:[#allocation3 + $0x1] sm:$0x1] %vm872_vm6, %v1063_v63  ;;  %v2547_v1 = vpop.f32.mrb[13].mxu1 }
 0x4c2   : > { %v1257_v2 = vpop.f32.mrb[14].mxu1 }
 0x4c3   : > { %1261 = vst.msk [vmem:[#allocation3 + $0x2] sm:$0x1] %vm872_vm6, %v1257_v2  ;;  %v2557_v3 = vpop.f32.mrb[15].mxu1 }
 0x4c6   : > { %v1451_v5 = vpop.f32.mrb[16].mxu1 }
 0x4c7   : > { %1455 = vst.msk [vmem:[#allocation3 + $0x3] sm:$0x1] %vm872_vm6, %v1451_v5  ;;  %v2567_v6 = vpop.f32.mrb[17].mxu1 }
 0x4ca   : > { %v1645_v7 = vpop.f32.mrb[18].mxu1 }
 0x4cb   : > { %1649 = vst.msk [vmem:[#allocation3 + $0x4] sm:$0x1] %vm872_vm6, %v1645_v7  ;;  %v2577_v4 = vpop.f32.mrb[19].mxu1 }
 0x4ce   : > { %v1839_v8 = vpop.f32.mrb[20].mxu1 }
 0x4cf   : > { %1843 = vst.msk [vmem:[#allocation3 + $0x5] sm:$0x1] %vm872_vm6, %v1839_v8  ;;  %v2587_v9 = vpop.f32.mrb[21].mxu1 }
 0x4d2   : > { %v2033_v10 = vpop.f32.mrb[22].mxu1 }
 0x4d3   : > { %2037 = vst.msk [vmem:[#allocation3 + $0x6] sm:$0x1] %vm872_vm6, %v2033_v10  ;;  %v2597_v11 = vpop.f32.mrb[23].mxu1 }
 0x4d6   : > { %v2227_v13 = vpop.f32.mrb[24].mxu1 }
 0x4d7   : > { %2231 = vst.msk [vmem:[#allocation3 + $0x7] sm:$0x1] %vm872_vm6, %v2227_v13  ;;  %v2607_v14 = vpop.f32.mrb[25].mxu1 }
 0x4de   : > { %v2232_v17 = vld [vmem:[#allocation3] sm:$0xff] }
 0x4df   : > { %v2241_v18 = vadd.f32 %v2240_v16, %v2232_v17 }
 0x4e1   : > { %v2253_v20 = vmul.f32 %v2251_v19, %v2241_v18 }
 0x4e3   : > { %v2254_v21 = vpack.c.bf16 %v2253_v20, %v2253_v20 }
 0x4e5   : > { %2617 = vmatmul.mubr.msk.bf16.vlgmr.msra.gmra.mrb[20].mxu0 %vm462_vm2, %v2254_v21 }
 0x5b8   : > { %v2324_v23 = vpop.f32.mrb[20].mxu0 }
 0x5b9   : > { %v2330_v22 = vadd.f32 %v2324_v23, %v2764_v0  ;;  %v2618_v24 = vpop.f32.mrb[21].mxu0 }
 0x5ba   : > { %v2327_v25 = vpop.f32.mrb[22].mxu0 }
 0x5bb   : > { %2331 = vst.msk [vmem:[%s381_s25] sm:$0xff] %vm385_vm0, %v2330_v22  ;;  %v2619_v47 = vpop.f32.mrb[23].mxu0 }
 0x5bc PF: > { %s21_s17 = sadd.s32 1, %s2682_s17  }
 0x5bd   : > { %p18_p4 = scmp.ge.s32.totalorder %s21_s17, 4  }
 0x5bf   :  { %20 = sbr.rel (!%p18_p4) target bundleno = 1 (0x1), region = 94 }

</bundles_post_ra>
